<compile_context>
chip_gen: v5e
topology: v5e:2x2
jax: 0.10.0
libtpu: 0.0.40
codegen_flags: <defaults>
</compile_context>

<pallas_src>
import functools
import math

import jax
import jax.numpy as jnp
from jax.experimental import pallas as pl
from jax.experimental.pallas import tpu as pltpu

LANE = 128      # vreg lane width
SUBLANE = 8     # vreg sublane count


def _round_up(x, m):
    return ((x + m - 1) // m) * m


def _vmem_capacity_bytes():
    """Physical VMEM of the local TPU (conservative default if query fails)."""
    try:
        return int(pltpu.get_tpu_info().vmem_capacity_bytes)
    except Exception:
        return 64 << 20   # v7x per-TensorCore VMEM (smallest of v5e/v6e/v7x)


# ----------------------------------------------------------------------------
# Kernels
# ----------------------------------------------------------------------------
def _fused_mlp_kernel(x_ref, *refs, n_layers, dims_pad):
    """Whole MLP on one batch tile; all weights resident in VMEM.

    refs = (w_0, ..., w_{n-1}, b_cat, o_ref)
      x_ref:   (TB, dims_pad[0])                     f32
      w_i:     (dims_pad[i], dims_pad[i+1])          bf16 (zero-padded)
      b_cat:   (n_layers, max(dims_pad[1:]))         f32  (zero-padded)
      o_ref:   (TB, dims_pad[-1])                    f32
    """
    w_refs = refs[:n_layers]
    b_ref = refs[n_layers]
    o_ref = refs[n_layers + 1]

    h = x_ref[...]                                   # f32 activations
    for li in range(n_layers):                       # static unroll (few layers)
        dout = dims_pad[li + 1]
        y = jnp.dot(h.astype(w_refs[li].dtype), w_refs[li][...],
                    preferred_element_type=jnp.float32)
        # NOTE: a stride-0 sublane-broadcast load of the bias row would avoid
        # the explicit per-layer broadcast; kept as-is (known-clean, tiny win).
        y = y + b_ref[li:li + 1, :dout]              # (1, dout) broadcast
        if li < n_layers - 1:
            h = jnp.maximum(y, 0.0)                  # ReLU (VPU)
        else:
            h = jnp.tanh(y)                          # tanh (EUP)
    o_ref[...] = h.astype(o_ref.dtype)


def _layer_kernel(x_ref, w_ref, b_ref, o_ref, *, last):
    """One Linear (+ReLU or tanh) layer, N-tiled (VMEM-budget fallback path)."""
    y = jnp.dot(x_ref[...].astype(w_ref.dtype), w_ref[...],
                preferred_element_type=jnp.float32)
    y = y + b_ref[...]                               # (1, TN) broadcast
    y = jnp.tanh(y) if last else jnp.maximum(y, 0.0)
    o_ref[...] = y.astype(o_ref.dtype)


# ----------------------------------------------------------------------------
# Parameter construction / one-time prep
# ----------------------------------------------------------------------------
def init_actor_params(key, input_size, output_size, hidden_layer_sizes=None):
    """PyTorch-Linear-style init: U(-1/sqrt(fan_in), 1/sqrt(fan_in))."""
    sizes = [input_size]
    if hidden_layer_sizes is not None:
        sizes += list(hidden_layer_sizes)
    sizes += [output_size]

    params = []
    for i in range(len(sizes) - 1):
        fan_in, fan_out = sizes[i], sizes[i + 1]
        key, kw, kb = jax.random.split(key, 3)
        bound = 1.0 / float(fan_in) ** 0.5
        w = jax.random.uniform(kw, (fan_in, fan_out), jnp.float32, -bound, bound)
        b = jax.random.uniform(kb, (1, fan_out), jnp.float32, -bound, bound)
        params.append((w, b))
    return params


def prepare_actor_params(params, weight_dtype=jnp.bfloat16):
    """One-time prep: lane-pad (128) weights/biases, cast weights to bf16.

    Do this once per parameter update, NOT per forward call.
    """
    dims = [params[0][0].shape[0]] + [w.shape[1] for w, _ in params]
    dims_pad = [_round_up(d, LANE) for d in dims]
    dmax = max(dims_pad[1:])

    w_pads = []
    for li, (w, _) in enumerate(params):
        wp = jnp.zeros((dims_pad[li], dims_pad[li + 1]), weight_dtype)
        wp = wp.at[: w.shape[0], : w.shape[1]].set(w.astype(weight_dtype))
        w_pads.append(wp)

    b_cat = jnp.zeros((len(params), dmax), jnp.float32)
    for li, (w, b) in enumerate(params):
        b_cat = b_cat.at[li, : w.shape[1]].set(
            jnp.asarray(b, jnp.float32).reshape(-1))

    return {"w": tuple(w_pads), "b": b_cat, "out_dim": int(dims[-1])}


# ----------------------------------------------------------------------------
# Forward
# ----------------------------------------------------------------------------
@functools.partial(jax.jit, static_argnames=("out_dim", "force_fallback"))
def _actor_forward_impl(w_pads, b_cat, state, *, out_dim, force_fallback=False):
    squeeze = state.ndim == 1
    h = state[None, :] if squeeze else state
    h = h.astype(jnp.float32)
    B, din = h.shape

    n_layers = len(w_pads)
    dims_pad = (int(w_pads[0].shape[0]),) + tuple(int(w.shape[1]) for w in w_pads)
    dmax = int(b_cat.shape[1])

    # Batch tile: sublane-aligned, capped at 128, and >=2 grid steps when B > 8
    # so v7x's second TensorCore gets work via the "parallel" batch axis.
    if B <= SUBLANE:
        TB = SUBLANE
    else:
        TB = min(128, _round_up((B + 1) // 2, SUBLANE))
    B_pad = _round_up(B, TB)

    x_pad = jnp.zeros((B_pad, dims_pad[0]), jnp.float32).at[:B, :din].set(h)

    # --- Static VMEM budget (all from shapes) --------------------------------
    w_bytes = sum(int(w.size) * w.dtype.itemsize for w in w_pads)
    single_buffer_weights = w_bytes > (8 << 20)       # constant blocks: 1 buffer
    w_buf = 1 if single_buffer_weights else 2
    resident = (w_bytes * w_buf
                + 2 * int(b_cat.size) * 4
                + 2 * TB * (dims_pad[0] + dims_pad[-1]) * 4
                + (2 << 20))                          # internal-scratch headroom
    cap = _vmem_capacity_bytes()
    use_fallback = force_fallback or resident > int(0.85 * cap)

    if not use_fallback:
        # Fused path: one pallas_call, weights resident across batch tiles.
        def _const_spec(shape):
            if single_buffer_weights:
                return pl.BlockSpec(shape, lambda i: (0, 0),
                                    pipeline_mode=pl.Buffered(1))
            return pl.BlockSpec(shape, lambda i: (0, 0))

        in_specs = [pl.BlockSpec((TB, dims_pad[0]), lambda i: (i, 0))]
        for li in range(n_layers):
            in_specs.append(_const_spec((dims_pad[li], dims_pad[li + 1])))
        in_specs.append(_const_spec((n_layers, dmax)))

        cp_kwargs = dict(dimension_semantics=("parallel",))
        if resident > (28 << 20):                     # above default scoped VMEM
            cp_kwargs["vmem_limit_bytes"] = min(int(resident * 1.25),
                                                int(0.9 * cap))

        kernel = functools.partial(_fused_mlp_kernel, n_layers=n_layers,
                                   dims_pad=dims_pad)
        out = pl.pallas_call(
            kernel,
            out_shape=jax.ShapeDtypeStruct((B_pad, dims_pad[-1]), jnp.float32),
            grid=(B_pad // TB,),
            in_specs=in_specs,
            out_specs=pl.BlockSpec((TB, dims_pad[-1]), lambda i: (i, 0)),
            compiler_params=pltpu.CompilerParams(**cp_kwargs),
        )(x_pad, *w_pads, b_cat)
    else:
        # Fallback: per-layer pallas_call, weights streamed in N-tiles (keeps
        # the kernel viable on v7x's 64 MiB VMEM for very wide hidden layers).
        out = x_pad
        for li in range(n_layers):
            K, N = dims_pad[li], dims_pad[li + 1]
            TN = math.gcd(N, 512)                     # divisor of N, multiple of 128
            out = pl.pallas_call(
                functools.partial(_layer_kernel, last=(li == n_layers - 1)),
                out_shape=jax.ShapeDtypeStruct((B_pad, N), jnp.float32),
                grid=(B_pad // TB, N // TN),
                in_specs=[pl.BlockSpec((TB, K), lambda i, j: (i, 0)),
                          pl.BlockSpec((K, TN), lambda i, j: (0, j)),
                          pl.BlockSpec((1, TN), lambda i, j: (0, j))],
                out_specs=pl.BlockSpec((TB, TN), lambda i, j: (i, j)),
                compiler_params=pltpu.CompilerParams(
                    dimension_semantics=("parallel", "parallel")),
            )(out, w_pads[li], b_cat[li:li + 1, :N])

    out = out[:B, :out_dim]
    return out[0] if squeeze else out


def actor_forward(prepped, state, force_fallback=False):
    """ActorNN.forward; `prepped` comes from prepare_actor_params(params)."""
    return _actor_forward_impl(prepped["w"], prepped["b"], state,
                               out_dim=prepped["out_dim"],
                               force_fallback=force_fallback)


# ----------------------------------------------------------------------------
# Plain-JAX references
# ----------------------------------------------------------------------------
def _reference_forward(params, state, weight_dtype=jnp.float32):
    """Plain-JAX MLP; weight_dtype=bf16 mirrors the kernel's bf16-weight math."""
    squeeze = state.ndim == 1
    h = state[None, :] if squeeze else state
    h = h.astype(jnp.float32)
    n = len(params)
    for li, (w, b) in enumerate(params):
        y = jnp.dot(h.astype(weight_dtype), w.astype(weight_dtype),
                    preferred_element_type=jnp.float32)
        y = y + jnp.asarray(b, jnp.float32).reshape(1, -1)
        h = jnp.tanh(y) if li == n - 1 else jnp.maximum(y, 0.0)
    return h[0] if squeeze else h


if __name__ == "__main__":
    key = jax.random.PRNGKey(0)
    key, kx = jax.random.split(key)

    # Small shapes consistent with the module: batch=2, input_size=16,
    # hidden_layer_sizes=[32, 32], output_size=8.
    B, INPUT, OUTPUT = 2, 16, 8
    HIDDEN = [32, 32]

    params = init_actor_params(key, INPUT, OUTPUT, HIDDEN)
    prepped = prepare_actor_params(params)            # one-time padding / bf16 cast
    x = jax.random.normal(kx, (B, INPUT), jnp.float32)

    out = jax.block_until_ready(actor_forward(prepped, x))
    assert out.shape == (B, OUTPUT)
    # Exact check against a reference doing identical bf16-weight math.
    ref_bf16 = _reference_forward(params, x, weight_dtype=jnp.bfloat16)
    assert jnp.allclose(out, ref_bf16, atol=2e-3, rtol=2e-3)
    # Sanity bound vs. the exact-f32 module semantics (bf16-weight deviation).
    ref_f32 = _reference_forward(params, x, weight_dtype=jnp.float32)
    assert jnp.allclose(out, ref_f32, atol=5e-2, rtol=5e-2)

    # 1-D state path (the PyTorch len(state.shape)==1 branch).
    out1d = jax.block_until_ready(actor_forward(prepped, x[0]))
    assert out1d.shape == (OUTPUT,)
    assert jnp.allclose(
        out1d, _reference_forward(params, x[0], weight_dtype=jnp.bfloat16),
        atol=2e-3, rtol=2e-3)

    # No-hidden-layer case (single Linear + tanh).
    key, k2 = jax.random.split(key)
    params1 = init_actor_params(k2, INPUT, OUTPUT, None)
    prepped1 = prepare_actor_params(params1)
    out_single = jax.block_until_ready(actor_forward(prepped1, x))
    assert out_single.shape == (B, OUTPUT)
    assert jnp.allclose(
        out_single, _reference_forward(params1, x, weight_dtype=jnp.bfloat16),
        atol=2e-3, rtol=2e-3)

    # Exercise the VMEM-budget fallback path (per-layer, N-tiled) as well.
    out_fb = jax.block_until_ready(actor_forward(prepped, x, force_fallback=True))
    assert out_fb.shape == (B, OUTPUT)
    assert jnp.allclose(out_fb, out, atol=1e-4, rtol=1e-4)

    print("KERNEL_OK")
</pallas_src>

<mosaic_0001>
module attributes {stable_mosaic.version = 11 : i64} {
  func.func @_fused_mlp_kernel(%arg0: i32, %arg1: memref<8x128xf32, #tpu.memory_space<vmem>>, %arg2: memref<128x128xbf16, #tpu.memory_space<vmem>>, %arg3: memref<128x128xbf16, #tpu.memory_space<vmem>>, %arg4: memref<128x128xbf16, #tpu.memory_space<vmem>>, %arg5: memref<3x128xf32, #tpu.memory_space<vmem>>, %arg6: memref<8x128xf32, #tpu.memory_space<vmem>>) attributes {dimension_semantics = [#tpu.dimension_semantics<parallel>], iteration_bounds = array<i64: 1>, scalar_prefetch = 0 : i64, scratch_operands = 0 : i64, tpu.core_type = #tpu.core_type<tc>, window_params = [{transform_indices = @transform_0, window_bounds = array<i64: 8, 128>}, {pipeline_mode = #tpu.pipeline_mode<synchronous>, transform_indices = @transform_1, window_bounds = array<i64: 128, 128>}, {pipeline_mode = #tpu.pipeline_mode<synchronous>, transform_indices = @transform_2, window_bounds = array<i64: 128, 128>}, {pipeline_mode = #tpu.pipeline_mode<synchronous>, transform_indices = @transform_3, window_bounds = array<i64: 128, 128>}, {pipeline_mode = #tpu.pipeline_mode<synchronous>, transform_indices = @transform_4, window_bounds = array<i64: 3, 128>}, {transform_indices = @transform_5, window_bounds = array<i64: 8, 128>}]} {
    %c0 = arith.constant 0 : index
    %c0_0 = arith.constant 0 : index
    %0 = vector.load %arg1[%c0, %c0_0] : memref<8x128xf32, #tpu.memory_space<vmem>>, vector<8x128xf32>
    %1 = arith.truncf %0 : vector<8x128xf32> to vector<8x128xbf16>
    %c0_1 = arith.constant 0 : index
    %c0_2 = arith.constant 0 : index
    %2 = vector.load %arg2[%c0_1, %c0_2] : memref<128x128xbf16, #tpu.memory_space<vmem>>, vector<128x128xbf16>
    %cst = arith.constant dense<0.000000e+00> : vector<8x128xf32>
    %3 = tpu.matmul %1, %2, %cst {dimension_numbers = #tpu.dot_dimension_numbers<[1], [0], [0], [1], [0, 0, 1, 1], [], []>} : vector<8x128xbf16>, vector<128x128xbf16>, vector<8x128xf32> -> vector<8x128xf32>
    %c0_3 = arith.constant 0 : index
    %c0_4 = arith.constant 0 : index
    %4 = vector.load %arg5[%c0_3, %c0_4] : memref<3x128xf32, #tpu.memory_space<vmem>>, vector<1x128xf32>
    %5 = vector.broadcast %4 : vector<1x128xf32> to vector<8x128xf32>
    %6 = arith.addf %3, %5 : vector<8x128xf32>
    %cst_5 = arith.constant 0.000000e+00 : f32
    %7 = vector.broadcast %cst_5 : f32 to vector<8x128xf32>
    %8 = arith.maximumf %6, %7 : vector<8x128xf32>
    %9 = arith.truncf %8 : vector<8x128xf32> to vector<8x128xbf16>
    %c0_6 = arith.constant 0 : index
    %c0_7 = arith.constant 0 : index
    %10 = vector.load %arg3[%c0_6, %c0_7] : memref<128x128xbf16, #tpu.memory_space<vmem>>, vector<128x128xbf16>
    %cst_8 = arith.constant dense<0.000000e+00> : vector<8x128xf32>
    %11 = tpu.matmul %9, %10, %cst_8 {dimension_numbers = #tpu.dot_dimension_numbers<[1], [0], [0], [1], [0, 0, 1, 1], [], []>} : vector<8x128xbf16>, vector<128x128xbf16>, vector<8x128xf32> -> vector<8x128xf32>
    %c1 = arith.constant 1 : index
    %c0_9 = arith.constant 0 : index
    %12 = vector.load %arg5[%c1, %c0_9] : memref<3x128xf32, #tpu.memory_space<vmem>>, vector<1x128xf32>
    %13 = vector.broadcast %12 : vector<1x128xf32> to vector<8x128xf32>
    %14 = arith.addf %11, %13 : vector<8x128xf32>
    %cst_10 = arith.constant 0.000000e+00 : f32
    %15 = vector.broadcast %cst_10 : f32 to vector<8x128xf32>
    %16 = arith.maximumf %14, %15 : vector<8x128xf32>
    %17 = arith.truncf %16 : vector<8x128xf32> to vector<8x128xbf16>
    %c0_11 = arith.constant 0 : index
    %c0_12 = arith.constant 0 : index
    %18 = vector.load %arg4[%c0_11, %c0_12] : memref<128x128xbf16, #tpu.memory_space<vmem>>, vector<128x128xbf16>
    %cst_13 = arith.constant dense<0.000000e+00> : vector<8x128xf32>
    %19 = tpu.matmul %17, %18, %cst_13 {dimension_numbers = #tpu.dot_dimension_numbers<[1], [0], [0], [1], [0, 0, 1, 1], [], []>} : vector<8x128xbf16>, vector<128x128xbf16>, vector<8x128xf32> -> vector<8x128xf32>
    %c2 = arith.constant 2 : index
    %c0_14 = arith.constant 0 : index
    %20 = vector.load %arg5[%c2, %c0_14] : memref<3x128xf32, #tpu.memory_space<vmem>>, vector<1x128xf32>
    %21 = vector.broadcast %20 : vector<1x128xf32> to vector<8x128xf32>
    %22 = arith.addf %19, %21 : vector<8x128xf32>
    %23 = math.tanh %22 : vector<8x128xf32>
    %c0_15 = arith.constant 0 : index
    %c0_16 = arith.constant 0 : index
    %24 = vector.load %arg6[%c0_15, %c0_16] : memref<8x128xf32, #tpu.memory_space<vmem>>, vector<8x128xf32>
    tpu.vector_store %arg6[%c0_15, %c0_16], %23 {strides = array<i32>} : memref<8x128xf32, #tpu.memory_space<vmem>>, vector<8x128xf32>,
    return
  }
  func.func @transform_0(%arg0: i32) -> (i32, i32) {
    %c0_i32 = arith.constant 0 : i32
    %c0_i32_0 = arith.constant 0 : i32
    return %arg0, %c0_i32 : i32, i32
  }
  func.func @transform_1(%arg0: i32) -> (i32, i32) {
    %c0_i32 = arith.constant 0 : i32
    %c0_i32_0 = arith.constant 0 : i32
    %c0_i32_1 = arith.constant 0 : i32
    return %c0_i32, %c0_i32_0 : i32, i32
  }
  func.func @transform_2(%arg0: i32) -> (i32, i32) {
    %c0_i32 = arith.constant 0 : i32
    %c0_i32_0 = arith.constant 0 : i32
    %c0_i32_1 = arith.constant 0 : i32
    return %c0_i32, %c0_i32_0 : i32, i32
  }
  func.func @transform_3(%arg0: i32) -> (i32, i32) {
    %c0_i32 = arith.constant 0 : i32
    %c0_i32_0 = arith.constant 0 : i32
    %c0_i32_1 = arith.constant 0 : i32
    return %c0_i32, %c0_i32_0 : i32, i32
  }
  func.func @transform_4(%arg0: i32) -> (i32, i32) {
    %c0_i32 = arith.constant 0 : i32
    %c0_i32_0 = arith.constant 0 : i32
    %c0_i32_1 = arith.constant 0 : i32
    return %c0_i32, %c0_i32_0 : i32, i32
  }
  func.func @transform_5(%arg0: i32) -> (i32, i32) {
    %c0_i32 = arith.constant 0 : i32
    %c0_i32_0 = arith.constant 0 : i32
    return %arg0, %c0_i32 : i32, i32
  }
}

</mosaic_0001>

<bundles_post_ra>
// kernel: _actor_forward_impl.1
= control target key start
LH: loop header
LB: loop body
LE: loop exit
PB: predicated region body
PF: predicated region fallthrough
CT: control target
= control target key end

     0   :  { %10 = vsyncpa [#allocation3], 0  ;;  %s583_s0 = inlined_call_operand.vmem [shape: f32[8,128], index: 0, kind: input, shape index: {}]   ;;  %s584_s1 = inlined_call_operand.hbm [shape: bf16[128,128], index: 1, kind: input, shape index: {}]   ;;  %s585_s2 = inlined_call_operand.hbm [shape: bf16[128,128], index: 2, kind: input, shape index: {}]   ;;  %s586_s3 = inlined_call_operand.hbm [shape: bf16[128,128], index: 3, kind: input, shape index: {}]   ;;  %s587_s4 = inlined_call_operand.vmem [shape: f32[3,128], index: 4, kind: input, shape index: {}]   ;;  %s588_s5 = inlined_call_operand.vmem [shape: f32[8,128], index: 5, kind: output, shape index: {}]  }
   0x1   :  { %11 = vsyncpa [#allocation5], 0  ;;  %s31_s20 = sshll.u32 %s585_s2, 4  ;;  %s524_s21 = smov [#allocation4]   ;;  %s32_s20 = int_to_ptr.hbm [resolvable:$true] %s31_s20 }
   0x2   :  { %s33_s22 = sshll.u32 %s524_s21, 4  ;;  %s18_s25 = sshll.u32 %s584_s1, 4  ;;  %s34_s22 = int_to_ptr.vmem [resolvable:$true] %s33_s22  ;;  %s19_s25 = int_to_ptr.hbm [resolvable:$true] %s18_s25 }
   0x3   :  { %s525_s26 = smov 64   ;;  %s526_s27 = smov 4  }
   0x4   :  { %39 = dma.hbm_to_vmem [thread:$0]  %s32_s20, 1024, %s34_s22, [#allocation5], %s525_s26, %s525_s26, %s526_s27  }
   0x5   :  { %s527_s28 = smov [#allocation2]   ;;  %s44_s7 = sshll.u32 %s586_s3, 4  ;;  %s45_s7 = int_to_ptr.hbm [resolvable:$true] %s44_s7 }
   0x6   :  { %s20_s29 = sshll.u32 %s527_s28, 4  ;;  %s528_s2 = smov [#allocation6]   ;;  %s21_s29 = int_to_ptr.vmem [resolvable:$true] %s20_s29 }
   0x7   :  { %26 = dma.hbm_to_vmem [thread:$0]  %s19_s25, 1024, %s21_s29, [#allocation3], %s525_s26, %s525_s26, %s526_s27  }
   0x8   :  { %s46_s8 = sshll.u32 %s528_s2, 4  ;;  %s47_s8 = int_to_ptr.vmem [resolvable:$true] %s46_s8 }
   0x9   :  { %52 = dma.hbm_to_vmem [thread:$0]  %s45_s7, 1024, %s47_s8, [#allocation5], %s525_s26, %s525_s26, %s526_s27  }
   0xa   :  { %520 = dma.done.wait [#allocation3], 1024  }
   0xb   :  { %521 = vsyncadd [#allocation3], 4294966272 }
   0xc   :  { %522 = dma.done.wait [#allocation5], 2048  }
   0xd   :  { %523 = vsyncadd [#allocation5], 4294965248  ;;  %v421_v0 = vld [vmem:[#allocation2 + $0x38] sm:$0xff]  ;;  %v420_v1 = vld [vmem:[#allocation2 + $0x30] sm:$0xff] }
   0xe   :  { %135 = vmatpush.bf16.msra.mxu0 %v421_v0  ;;  %v429_v2 = vld [vmem:[#allocation4 + $0x38] sm:$0xff]  ;;  %v428_v3 = vld [vmem:[#allocation4 + $0x30] sm:$0xff]  ;;  %v419_v4 = vld [vmem:[#allocation2 + $0x28] sm:$0xff] }
   0xf   :  { %216 = vmatpush.bf16.msra.mxu1 %v429_v2  ;;  %v427_v5 = vld [vmem:[#allocation4 + $0x28] sm:$0xff]  ;;  %v418_v6 = vld [vmem:[#allocation2 + $0x20] sm:$0xff]  ;;  %v417_v8 = vld [vmem:[#allocation2 + $0x18] sm:$0xff] }
  0x10   :  { %v426_v7 = vld [vmem:[#allocation4 + $0x20] sm:$0xff]  ;;  %v425_v9 = vld [vmem:[#allocation4 + $0x18] sm:$0xff]  ;;  %v416_v10 = vld [vmem:[#allocation2 + $0x10] sm:$0xff] }
  0x11   :  { %v424_v11 = vld [vmem:[#allocation4 + $0x10] sm:$0xff]  ;;  %v415_v12 = vld [vmem:[#allocation2 + $0x8] sm:$0xff]  ;;  %v414_v13 = vld [vmem:[#allocation2] sm:$0xff] }
  0x12   :  { %136 = vmatpush.bf16.msra.mxu0 %v420_v1  ;;  %v67_v14 = vld [vmem:[%s583_s0] sm:$0xff]  ;;  %v423_v16 = vld [vmem:[#allocation4 + $0x8] sm:$0xff]  ;;  %v437_v18 = vld [vmem:[#allocation6 + $0x38] sm:$0xff] }
  0x13   :  { %217 = vmatpush.bf16.msra.mxu1 %v428_v3  ;;  %v68_v15 = vpack.c.bf16 %v67_v14, %v67_v14  ;;  %v422_v17 = vld [vmem:[#allocation4] sm:$0xff]  ;;  %297 = vmatpush.bf16.msra.mxu2 %v437_v18  ;;  %v436_v19 = vld [vmem:[#allocation6 + $0x30] sm:$0xff]  ;;  %v435_v20 = vld [vmem:[#allocation6 + $0x28] sm:$0xff] }
  0x14   :  { %v434_v21 = vld [vmem:[#allocation6 + $0x20] sm:$0xff]  ;;  %v433_v22 = vld [vmem:[#allocation6 + $0x18] sm:$0xff]  ;;  %v432_v23 = vld [vmem:[#allocation6 + $0x10] sm:$0xff] }
  0x15   :  { %v443_v24 = vld [vmem:[%s587_s4] ss:$0 sm:$0xff]  ;;  %v431_v30 = vld [vmem:[#allocation6 + $0x8] sm:$0xff]  ;;  %v444_v32 = vld [vmem:[%s587_s4 + $0x1] ss:$0 sm:$0xff] }
  0x16   :  { %137 = vmatpush.bf16.msra.mxu0 %v419_v4  ;;  %v430_v31 = vld [vmem:[#allocation6] sm:$0xff] }
  0x17   :  { %218 = vmatpush.bf16.msra.mxu1 %v427_v5  ;;  %298 = vmatpush.bf16.msra.mxu2 %v436_v19  ;;  %v445_v38 = vld [vmem:[%s587_s4 + $0x2] ss:$0 sm:$0xff] }
  0x1a   :  { %138 = vmatpush.bf16.msra.mxu0 %v418_v6 }
  0x1b   :  { %219 = vmatpush.bf16.msra.mxu1 %v426_v7  ;;  %299 = vmatpush.bf16.msra.mxu2 %v435_v20 }
  0x1e   :  { %139 = vmatpush.bf16.msra.mxu0 %v417_v8 }
  0x1f   :  { %220 = vmatpush.bf16.msra.mxu1 %v425_v9  ;;  %300 = vmatpush.bf16.msra.mxu2 %v434_v21 }
  0x22   :  { %140 = vmatpush.bf16.msra.mxu0 %v416_v10 }
  0x23   :  { %221 = vmatpush.bf16.msra.mxu1 %v424_v11  ;;  %301 = vmatpush.bf16.msra.mxu2 %v433_v22 }
  0x26   :  { %141 = vmatpush.bf16.msra.mxu0 %v415_v12 }
  0x27   :  { %222 = vmatpush.bf16.msra.mxu1 %v423_v16  ;;  %302 = vmatpush.bf16.msra.mxu2 %v432_v23 }
  0x2a   :  { %142 = vmatpush.bf16.msra.mxu0 %v414_v13 }
  0x2b   :  { %223 = vmatpush.bf16.msra.mxu1 %v422_v17  ;;  %303 = vmatpush.bf16.msra.mxu2 %v431_v30 }
  0x2d   :  { %143 = vmatmul.bf16.vlgmr.msra.gmra.mxu0 %v68_v15 }
  0x2f   :  { %304 = vmatpush.bf16.msra.mxu2 %v430_v31 }
  0xaa   :  { %v144_v25 = vpop.f32.mrf.mxu0 }
  0xab   :  { %v145_v26 = vadd.f32 %v443_v24, %v144_v25 }
  0xad   :  { %v148_v27 = vmax.f32 %v145_v26, 0.0 }
  0xaf   :  { %v149_v28 = vpack.c.bf16 %v148_v27, %v148_v27 }
  0xb1   :  { %224 = vmatmul.bf16.vlgmr.msra.gmra.mxu1 %v149_v28 }
  0xb2   :  { %v146_v29 = vpop.f32.mrf.mxu0 }
 0x12e   :  { %v225_v33 = vpop.f32.mrf.mxu1 }
 0x12f   :  { %v226_v34 = vadd.f32 %v444_v32, %v225_v33 }
 0x131   :  { %v229_v35 = vmax.f32 %v226_v34, 0.0 }
 0x133   :  { %v230_v36 = vpack.c.bf16 %v229_v35, %v229_v35 }
 0x135   :  { %305 = vmatmul.bf16.vlgmr.msra.gmra.mxu2 %v230_v36 }
 0x136   :  { %v227_v37 = vpop.f32.mrf.mxu1 }
 0x1b8   :  { %v306_v39 = vpop.f32.mrf.mxu2 }
 0x1b9   :  { %v307_v40 = vadd.f32 %v445_v38, %v306_v39 }
 0x1bb   :  { %446 = vtanh.f32 %v307_v40 }
 0x1c0   :  { %v308_v41 = vpop.f32.mrf.mxu2 }
 0x1c1   :  { %v447_v42 = vpop.eup %446 }
 0x1c2   :  { %311 = vst [vmem:[%s588_s5] sm:$0xff] %v447_v42 }
 0x1c3   :  { %316 = vsyncpa [#allocation3], 1 }
 0x1c4   :  { %317 = vsyncpa [#allocation5], 1 }

</bundles_post_ra>
